<compile_context>
chip_gen: v5e
topology: v5e:2x2
jax: 0.10.0
libtpu: 0.0.40
codegen_flags: <defaults>
</compile_context>

<pallas_src>
import jax
import jax.numpy as jnp
from jax import lax
from jax.experimental import pallas as pl
from jax.experimental.pallas import tpu as pltpu

DROP_P = 0.8
KEEP_P = 1.0 - DROP_P
# bits are uniform int32; keep iff bits >= KEEP_THRESHOLD  ->  P(keep) ~= 0.2
KEEP_THRESHOLD = (1 << 31) - int(round(KEEP_P * (1 << 32)))   # 1288490189

TILE_B = 1024   # batch tile; (1024,100) f32 double-buffered ~= 0.8 MiB of VMEM


def _i32(v):
    """Python int -> wrapped int32 constant (two's complement)."""
    v &= 0xFFFFFFFF
    if v >= 1 << 31:
        v -= 1 << 32
    return jnp.int32(v)


def _shr_logical(z, k):
    """Logical right shift on int32: arithmetic shift + mask of sign bits."""
    return (z >> k) & jnp.int32((1 << (32 - k)) - 1)


def _hash_i32(z):
    """lowbias32 avalanche hash on int32 lanes (wrapping muls, logical shifts)."""
    z = z ^ _shr_logical(z, 16)
    z = z * _i32(0x7FEB352D)
    z = z ^ _shr_logical(z, 15)
    z = z * _i32(0x846CA68B)
    z = z ^ _shr_logical(z, 16)
    return z


def ednet_kernel(seed_ref, x_ref, wenc_ref, benc_ref, wdec_ref, bdec_ref, o_ref):
    tile_b, feat = x_ref.shape                    # (tile, 100)

    # Fused encoder_1 / encoder_2: one block-diagonal (100,100) matmul on the MXU.
    h = jnp.dot(x_ref[...], wenc_ref[...], preferred_element_type=jnp.float32)
    h = jnp.maximum(h + benc_ref[...], 0.0)

    # Dropout(p=0.8): integer-threshold mask from a counter-based hash.
    # Keyed on the GLOBAL element index so every batch tile gets a distinct mask.
    row = lax.broadcasted_iota(jnp.int32, (tile_b, feat), 0)
    col = lax.broadcasted_iota(jnp.int32, (tile_b, feat), 1)
    g_row = row + pl.program_id(0) * tile_b
    gidx = g_row * feat + col
    bits = _hash_i32(gidx ^ (seed_ref[0] * _i32(0x9E3779B9)))
    keep = bits >= jnp.int32(KEEP_THRESHOLD)      # P(keep) = 0.2
    h = jnp.where(keep, h, 0.0)                   # 1/keep scale folded into wdec

    # Decoder on the (virtual) concat(latent_1, latent_2): h @ (Wd^T * 1/keep) + bd.
    out = jnp.dot(h, wdec_ref[...], preferred_element_type=jnp.float32)
    o_ref[...] = (out + bdec_ref[...]).astype(o_ref.dtype)


def init_params(key):
    """Deterministic init mimicking nn.Linear's uniform(-1/sqrt(fan_in), +)."""
    k = jax.random.split(key, 6)

    def lin(kw, kb, fan_in, fan_out):
        bound = 1.0 / jnp.sqrt(fan_in)
        w = jax.random.uniform(kw, (fan_out, fan_in), jnp.float32, -bound, bound)
        b = jax.random.uniform(kb, (fan_out,), jnp.float32, -bound, bound)
        return w, b

    w1, b1 = lin(k[0], k[1], 50, 50)   # encoder_1
    w2, b2 = lin(k[2], k[3], 50, 50)   # encoder_2
    wd, bd = lin(k[4], k[5], 100, 5)   # decoder
    return dict(w1=w1, b1=b1, w2=w2, b2=b2, wd=wd, bd=bd)


def prepare_ednet_params(params, dtype=jnp.float32):
    """One-time kernel-side weight prep: transpose, block-diag fuse the two
    encoders, fold the inverted-dropout 1/keep scale into the decoder weight."""
    w_enc = jnp.zeros((100, 100), jnp.float32)
    w_enc = w_enc.at[:50, :50].set(params["w1"].T)
    w_enc = w_enc.at[50:, 50:].set(params["w2"].T)
    b_enc = jnp.concatenate([params["b1"], params["b2"]]).reshape(1, 100)
    w_dec = params["wd"].T * (1.0 / KEEP_P)       # (100, 5), 1/keep folded in
    b_dec = params["bd"].reshape(1, 5)
    return dict(
        w_enc=w_enc.astype(dtype),
        b_enc=b_enc.astype(jnp.float32),          # biases / elementwise stay f32
        w_dec=w_dec.astype(dtype),
        b_dec=b_dec.astype(jnp.float32),
    )


def ednet_forward(x1, x2, kparams, seed=0, dtype=jnp.float32):
    """EDNet forward.  `dtype=jnp.bfloat16` halves the HBM read stream on
    v6e/v7x; the matmuls still accumulate in f32."""
    B = x1.shape[0]
    # Lane-dense (B,100) input; the block-diagonal encoder weight reproduces
    # the two independent 50->50 encoders exactly.
    x = jnp.concatenate([x1, x2], axis=1).astype(dtype)

    if B <= TILE_B:
        tile_b, b_pad = B, B
    else:
        tile_b = TILE_B
        b_pad = pl.cdiv(B, TILE_B) * TILE_B
        if b_pad != B:
            x = jnp.pad(x, ((0, b_pad - B), (0, 0)))
    grid = (b_pad // tile_b,)

    seed_arr = jnp.array([seed], dtype=jnp.int32)

    out = pl.pallas_call(
        ednet_kernel,
        out_shape=jax.ShapeDtypeStruct((b_pad, 5), jnp.float32),
        grid_spec=pltpu.PrefetchScalarGridSpec(
            num_scalar_prefetch=1,                # seed -> SMEM
            grid=grid,
            in_specs=[
                # batch-tiled, double-buffered input stream
                pl.BlockSpec((tile_b, 100), lambda i, seed: (i, 0)),
                # weights/biases: constant index_map -> resident across the grid
                pl.BlockSpec((100, 100), lambda i, seed: (0, 0)),
                pl.BlockSpec((1, 100), lambda i, seed: (0, 0)),
                pl.BlockSpec((100, 5), lambda i, seed: (0, 0)),
                pl.BlockSpec((1, 5), lambda i, seed: (0, 0)),
            ],
            out_specs=pl.BlockSpec((tile_b, 5), lambda i, seed: (i, 0)),
        ),
        compiler_params=pltpu.CompilerParams(
            dimension_semantics=("parallel",),    # megacore-shard the batch loop
            vmem_limit_bytes=32 * 1024 * 1024,    # safe on v5e / v6e / v7x
        ),
    )(seed_arr, x, kparams["w_enc"], kparams["b_enc"],
      kparams["w_dec"], kparams["b_dec"])
    # TODO(synk): if the 5-lane-wide output store ever shows up in a profile at
    # very large B, switch to a lane-dense (transposed / packed) output layout.
    return out[:B]


if __name__ == "__main__":
    key = jax.random.PRNGKey(0)
    kx1, kx2, kp = jax.random.split(key, 3)

    B = 8
    x1 = jax.random.normal(kx1, (B, 50), dtype=jnp.float32)
    x2 = jax.random.normal(kx2, (B, 50), dtype=jnp.float32)
    params = init_params(kp)
    kparams = prepare_ednet_params(params)

    out = ednet_forward(x1, x2, kparams, seed=0)
    out = jax.block_until_ready(out)
    assert out.shape == (B, 5) and out.dtype == jnp.float32
    assert bool(jnp.all(jnp.isfinite(out)))
    print("KERNEL_OK")
</pallas_src>

<mosaic_0001>
module attributes {stable_mosaic.version = 11 : i64} {
  func.func @ednet_kernel(%arg0: i32, %arg1: memref<1xi32, #tpu.memory_space<smem>>, %arg2: memref<8x100xf32, #tpu.memory_space<vmem>>, %arg3: memref<100x100xf32, #tpu.memory_space<vmem>>, %arg4: memref<1x100xf32, #tpu.memory_space<vmem>>, %arg5: memref<100x5xf32, #tpu.memory_space<vmem>>, %arg6: memref<1x5xf32, #tpu.memory_space<vmem>>, %arg7: memref<8x5xf32, #tpu.memory_space<vmem>>) attributes {dimension_semantics = [#tpu.dimension_semantics<parallel>], iteration_bounds = array<i64: 1>, scalar_prefetch = 1 : i64, scratch_operands = 0 : i64, tpu.core_type = #tpu.core_type<tc>, window_params = [{transform_indices = @transform_0, window_bounds = array<i64: 8, 100>}, {pipeline_mode = #tpu.pipeline_mode<synchronous>, transform_indices = @transform_1, window_bounds = array<i64: 100, 100>}, {pipeline_mode = #tpu.pipeline_mode<synchronous>, transform_indices = @transform_2, window_bounds = array<i64: 1, 100>}, {pipeline_mode = #tpu.pipeline_mode<synchronous>, transform_indices = @transform_3, window_bounds = array<i64: 100, 5>}, {pipeline_mode = #tpu.pipeline_mode<synchronous>, transform_indices = @transform_4, window_bounds = array<i64: 1, 5>}, {transform_indices = @transform_5, window_bounds = array<i64: 8, 5>}]} {
    %c0 = arith.constant 0 : index
    %c0_0 = arith.constant 0 : index
    %0 = vector.load %arg2[%c0, %c0_0] : memref<8x100xf32, #tpu.memory_space<vmem>>, vector<8x100xf32>
    %c0_1 = arith.constant 0 : index
    %c0_2 = arith.constant 0 : index
    %1 = vector.load %arg3[%c0_1, %c0_2] : memref<100x100xf32, #tpu.memory_space<vmem>>, vector<100x100xf32>
    %cst = arith.constant dense<0.000000e+00> : vector<8x100xf32>
    %2 = tpu.matmul %0, %1, %cst {dimension_numbers = #tpu.dot_dimension_numbers<[1], [0], [0], [1], [0, 0, 1, 1], [], []>} : vector<8x100xf32>, vector<100x100xf32>, vector<8x100xf32> -> vector<8x100xf32>
    %c0_3 = arith.constant 0 : index
    %c0_4 = arith.constant 0 : index
    %3 = vector.load %arg4[%c0_3, %c0_4] : memref<1x100xf32, #tpu.memory_space<vmem>>, vector<1x100xf32>
    %4 = vector.broadcast %3 : vector<1x100xf32> to vector<8x100xf32>
    %5 = arith.addf %2, %4 : vector<8x100xf32>
    %cst_5 = arith.constant 0.000000e+00 : f32
    %6 = vector.broadcast %cst_5 : f32 to vector<8x100xf32>
    %7 = arith.maximumf %5, %6 : vector<8x100xf32>
    %8 = tpu.iota {dimensions = array<i32: 0>} : vector<8x100xi32>
    %9 = tpu.iota {dimensions = array<i32: 1>} : vector<8x100xi32>
    %c8_i32 = arith.constant 8 : i32
    %10 = arith.muli %arg0, %c8_i32 : i32
    %11 = vector.broadcast %10 : i32 to vector<8x100xi32>
    %12 = arith.addi %8, %11 : vector<8x100xi32>
    %c100_i32 = arith.constant 100 : i32
    %13 = vector.broadcast %c100_i32 : i32 to vector<8x100xi32>
    %14 = arith.muli %12, %13 : vector<8x100xi32>
    %15 = arith.addi %14, %9 : vector<8x100xi32>
    %c0_6 = arith.constant 0 : index
    %16 = memref.load %arg1[%c0_6] : memref<1xi32, #tpu.memory_space<smem>>
    %c-1640531527_i32 = arith.constant -1640531527 : i32
    %17 = arith.muli %16, %c-1640531527_i32 : i32
    %18 = vector.broadcast %17 : i32 to vector<8x100xi32>
    %19 = arith.xori %15, %18 : vector<8x100xi32>
    %c16_i32 = arith.constant 16 : i32
    %20 = vector.broadcast %c16_i32 : i32 to vector<8x100xi32>
    %21 = arith.shrsi %19, %20 : vector<8x100xi32>
    %c65535_i32 = arith.constant 65535 : i32
    %22 = vector.broadcast %c65535_i32 : i32 to vector<8x100xi32>
    %23 = arith.andi %21, %22 : vector<8x100xi32>
    %24 = arith.xori %19, %23 : vector<8x100xi32>
    %c2146121005_i32 = arith.constant 2146121005 : i32
    %25 = vector.broadcast %c2146121005_i32 : i32 to vector<8x100xi32>
    %26 = arith.muli %24, %25 : vector<8x100xi32>
    %c15_i32 = arith.constant 15 : i32
    %27 = vector.broadcast %c15_i32 : i32 to vector<8x100xi32>
    %28 = arith.shrsi %26, %27 : vector<8x100xi32>
    %c131071_i32 = arith.constant 131071 : i32
    %29 = vector.broadcast %c131071_i32 : i32 to vector<8x100xi32>
    %30 = arith.andi %28, %29 : vector<8x100xi32>
    %31 = arith.xori %26, %30 : vector<8x100xi32>
    %c-2073254261_i32 = arith.constant -2073254261 : i32
    %32 = vector.broadcast %c-2073254261_i32 : i32 to vector<8x100xi32>
    %33 = arith.muli %31, %32 : vector<8x100xi32>
    %c16_i32_7 = arith.constant 16 : i32
    %34 = vector.broadcast %c16_i32_7 : i32 to vector<8x100xi32>
    %35 = arith.shrsi %33, %34 : vector<8x100xi32>
    %c65535_i32_8 = arith.constant 65535 : i32
    %36 = vector.broadcast %c65535_i32_8 : i32 to vector<8x100xi32>
    %37 = arith.andi %35, %36 : vector<8x100xi32>
    %38 = arith.xori %33, %37 : vector<8x100xi32>
    %c1288490189_i32 = arith.constant 1288490189 : i32
    %39 = vector.broadcast %c1288490189_i32 : i32 to vector<8x100xi32>
    %40 = arith.cmpi sge, %38, %39 : vector<8x100xi32>
    %cst_9 = arith.constant 0.000000e+00 : f32
    %41 = vector.broadcast %cst_9 : f32 to vector<8x100xf32>
    %42 = arith.select %40, %7, %41 : vector<8x100xi1>, vector<8x100xf32>
    %c0_10 = arith.constant 0 : index
    %c0_11 = arith.constant 0 : index
    %43 = vector.load %arg5[%c0_10, %c0_11] : memref<100x5xf32, #tpu.memory_space<vmem>>, vector<100x5xf32>
    %cst_12 = arith.constant dense<0.000000e+00> : vector<8x5xf32>
    %44 = tpu.matmul %42, %43, %cst_12 {dimension_numbers = #tpu.dot_dimension_numbers<[1], [0], [0], [1], [0, 0, 1, 1], [], []>} : vector<8x100xf32>, vector<100x5xf32>, vector<8x5xf32> -> vector<8x5xf32>
    %c0_13 = arith.constant 0 : index
    %c0_14 = arith.constant 0 : index
    %45 = vector.load %arg6[%c0_13, %c0_14] : memref<1x5xf32, #tpu.memory_space<vmem>>, vector<1x5xf32>
    %46 = vector.broadcast %45 : vector<1x5xf32> to vector<8x5xf32>
    %47 = arith.addf %44, %46 : vector<8x5xf32>
    %c0_15 = arith.constant 0 : index
    %c0_16 = arith.constant 0 : index
    %48 = vector.load %arg7[%c0_15, %c0_16] : memref<8x5xf32, #tpu.memory_space<vmem>>, vector<8x5xf32>
    tpu.vector_store %arg7[%c0_15, %c0_16], %47 {strides = array<i32>} : memref<8x5xf32, #tpu.memory_space<vmem>>, vector<8x5xf32>,
    return
  }
  func.func @transform_0(%arg0: i32, %arg1: memref<1xi32, #tpu.memory_space<smem>>) -> (i32, i32) {
    %c0_i32 = arith.constant 0 : i32
    %c0_i32_0 = arith.constant 0 : i32
    return %arg0, %c0_i32 : i32, i32
  }
  func.func @transform_1(%arg0: i32, %arg1: memref<1xi32, #tpu.memory_space<smem>>) -> (i32, i32) {
    %c0_i32 = arith.constant 0 : i32
    %c0_i32_0 = arith.constant 0 : i32
    %c0_i32_1 = arith.constant 0 : i32
    return %c0_i32, %c0_i32_0 : i32, i32
  }
  func.func @transform_2(%arg0: i32, %arg1: memref<1xi32, #tpu.memory_space<smem>>) -> (i32, i32) {
    %c0_i32 = arith.constant 0 : i32
    %c0_i32_0 = arith.constant 0 : i32
    %c0_i32_1 = arith.constant 0 : i32
    return %c0_i32, %c0_i32_0 : i32, i32
  }
  func.func @transform_3(%arg0: i32, %arg1: memref<1xi32, #tpu.memory_space<smem>>) -> (i32, i32) {
    %c0_i32 = arith.constant 0 : i32
    %c0_i32_0 = arith.constant 0 : i32
    %c0_i32_1 = arith.constant 0 : i32
    return %c0_i32, %c0_i32_0 : i32, i32
  }
  func.func @transform_4(%arg0: i32, %arg1: memref<1xi32, #tpu.memory_space<smem>>) -> (i32, i32) {
    %c0_i32 = arith.constant 0 : i32
    %c0_i32_0 = arith.constant 0 : i32
    %c0_i32_1 = arith.constant 0 : i32
    return %c0_i32, %c0_i32_0 : i32, i32
  }
  func.func @transform_5(%arg0: i32, %arg1: memref<1xi32, #tpu.memory_space<smem>>) -> (i32, i32) {
    %c0_i32 = arith.constant 0 : i32
    %c0_i32_0 = arith.constant 0 : i32
    return %arg0, %c0_i32 : i32, i32
  }
}

</mosaic_0001>

<bundles_post_ra>
// kernel: tpu_custom_call.1
= control target key start
LH: loop header
LB: loop body
LE: loop exit
PB: predicated region body
PF: predicated region fallthrough
CT: control target
= control target key end

     0   :  { %vm45_vm0 = vcmask 1043456   ;;  %s324_s0 = inlined_call_operand.<no memory space> [shape: s32[1], index: 0, kind: input, shape index: {}]   ;;  %s325_s1 = inlined_call_operand.vmem [shape: f32[8,100], index: 1, kind: input, shape index: {}]   ;;  %s326_s2 = inlined_call_operand.vmem [shape: f32[100,100], index: 2, kind: input, shape index: {}]   ;;  %s327_s3 = inlined_call_operand.vmem [shape: f32[1,100], index: 3, kind: input, shape index: {}]   ;;  %s328_s4 = inlined_call_operand.vmem [shape: f32[100,5], index: 4, kind: input, shape index: {}]   ;;  %s329_s5 = inlined_call_operand.vmem [shape: f32[1,5], index: 5, kind: input, shape index: {}]   ;;  %s330_s6 = inlined_call_operand.hbm [shape: f32[8,5], index: 6, kind: output, shape index: {}]  }
   0x1   :  { %v36_v0 = vld [vmem:[%s326_s2 + $0x60] sm:$0xf]  ;;  %v35_v1 = vld [vmem:[%s326_s2 + $0x58] sm:$0xff]  ;;  %v34_v2 = vld [vmem:[%s326_s2 + $0x50] sm:$0xff] }
   0x2   :  { %157 = vmatpush.msk.msra.mxu0 %vm45_vm0, %v36_v0  ;;  %v33_v3 = vld [vmem:[%s326_s2 + $0x48] sm:$0xff]  ;;  %v108_v4 = vld [vmem:[%s328_s4 + $0x60] sm:$0xf]  ;;  %v107_v5 = vld [vmem:[%s328_s4 + $0x58] sm:$0xff] }
   0x3   :  { %162 = vmatpush.msk.msra.mxu1 %vm45_vm0, %v108_v4  ;;  %v32_v6 = vld [vmem:[%s326_s2 + $0x40] sm:$0xff]  ;;  %v106_v7 = vld [vmem:[%s328_s4 + $0x50] sm:$0xff]  ;;  %v31_v8 = vld [vmem:[%s326_s2 + $0x38] sm:$0xff] }
   0x4   :  { %53 = vmatpush.msra.mxu0 %v35_v1  ;;  %v105_v9 = vld [vmem:[%s328_s4 + $0x48] sm:$0xff] }
   0x5   :  { %123 = vmatpush.msra.mxu1 %v107_v5 }
   0x6   :  { %54 = vmatpush.msra.mxu0 %v34_v2 }
   0x7   :  { %124 = vmatpush.msra.mxu1 %v106_v7 }
   0x8   :  { %55 = vmatpush.msra.mxu0 %v33_v3 }
   0xa   :  { %56 = vmatpush.msra.mxu0 %v32_v6 }
   0xb   :  { %12 = vsyncpa [#allocation5], 0  ;;  %v30_v10 = vld [vmem:[%s326_s2 + $0x30] sm:$0xff]  ;;  %v104_v11 = vld [vmem:[%s328_s4 + $0x40] sm:$0xff]  ;;  %125 = vmatpush.msra.mxu1 %v105_v9  ;;  %vm41_vm1 = vcmask 818176   ;;  %v70_v24 = vlaneseq  ;;  %s193_s30 = smov [#allocation4]  }
   0xc   :  { %57 = vmatpush.msra.mxu0 %v31_v8  ;;  %v29_v12 = vld [vmem:[%s326_s2 + $0x28] sm:$0xff]  ;;  %v103_v13 = vld [vmem:[%s328_s4 + $0x38] sm:$0xff]  ;;  %v28_v14 = vld [vmem:[%s326_s2 + $0x20] sm:$0xff]  ;;  %s80_s23 = smul.u32 2654435769, %s324_s0  ;;  %s146_s7 = sshll.u32 %s193_s30, 4  ;;  %s147_s7 = int_to_ptr.vmem [resolvable:$true] %s146_s7 }
   0xd   :  { %126 = vmatpush.msra.mxu1 %v104_v11  ;;  %v102_v15 = vld [vmem:[%s328_s4 + $0x30] sm:$0xff]  ;;  %v27_v16 = vld [vmem:[%s326_s2 + $0x18] sm:$0xff]  ;;  %v101_v17 = vld [vmem:[%s328_s4 + $0x28] sm:$0xff]  ;;  %v71_v25 = vshrl.u32 %v70_v24, 7  ;;  %v73_v26 = vand.u32 127, %v70_v24  ;;  %s148_s10 = sshll.u32 %s330_s6, 4  ;;  %s149_s10 = int_to_ptr.hbm [resolvable:$true] %s148_s10 }
   0xe   :  { %58 = vmatpush.msra.mxu0 %v30_v10  ;;  %v26_v18 = vld [vmem:[%s326_s2 + $0x10] sm:$0xff]  ;;  %v100_v19 = vld [vmem:[%s328_s4 + $0x20] sm:$0xff]  ;;  %v25_v20 = vld [vmem:[%s326_s2 + $0x8] sm:$0xff]  ;;  %v81_v29 = vstv %s80_s23  ;;  %vm139_vm3 = vcmask 39936  }
   0xf   :  { %127 = vmatpush.msra.mxu1 %v103_v13  ;;  %v99_v21 = vld [vmem:[%s328_s4 + $0x18] sm:$0xff]  ;;  %v24_v22 = vld [vmem:[%s326_s2] sm:$0xff]  ;;  %v77_v27 = vmul.u32 100, %v71_v25  ;;  %v98_v31 = vld [vmem:[%s328_s4 + $0x10] sm:$0xff] }
  0x10   :  { %59 = vmatpush.msra.mxu0 %v29_v12  ;;  %v23_v23 = vld [vmem:[%s325_s1] sm:$0xff]  ;;  %v97_v32 = vld [vmem:[%s328_s4 + $0x8] sm:$0xff] }
  0x11   :  { %128 = vmatpush.msra.mxu1 %v102_v15  ;;  %v78_v28 = vadd.s32 %v77_v27, %v73_v26  ;;  %v96_v34 = vld [vmem:[%s328_s4] sm:$0xff] }
  0x12   :  { %60 = vmatpush.msra.mxu0 %v28_v14  ;;  %v165_v41 = vld [vmem:[%s327_s3] ss:$0 sm:$0xff] }
  0x13   :  { %129 = vmatpush.msra.mxu1 %v101_v17  ;;  %v82_v30 = vxor.u32 %v81_v29, %v78_v28  ;;  %v166_v47 = vld [vmem:[%s329_s5] ss:$0 sm:$0xff] }
  0x14   :  { %61 = vmatpush.msra.mxu0 %v27_v16 }
  0x15   :  { %130 = vmatpush.msra.mxu1 %v100_v19  ;;  %v159_v33 = vshrl.u32 %v82_v30, 16 }
  0x16   :  { %62 = vmatpush.msra.mxu0 %v26_v18 }
  0x17   :  { %131 = vmatpush.msra.mxu1 %v99_v21  ;;  %v85_v35 = vxor.u32 %v159_v33, %v82_v30 }
  0x18   :  { %63 = vmatpush.msra.mxu0 %v25_v20 }
  0x19   :  { %132 = vmatpush.msra.mxu1 %v98_v31  ;;  %v86_v36 = vmul.u32 2146121005, %v85_v35 }
  0x1a   :  { %64 = vmatpush.msra.mxu0 %v24_v22 }
  0x1b   :  { %158 = vmatmul.msk.f32.vlgmr.msra.gmra.mxu0 %vm41_vm1, %v23_v23  ;;  %133 = vmatpush.msra.mxu1 %v97_v32  ;;  %v160_v37 = vshrl.u32 %v86_v36, 15 }
  0x1d   :  { %134 = vmatpush.msra.mxu1 %v96_v34  ;;  %v89_v38 = vxor.u32 %v160_v37, %v86_v36 }
  0x1f   :  { %v90_v39 = vmul.u32 2221713035, %v89_v38 }
  0x21   :  { %v161_v40 = vshrl.u32 %v90_v39, 16 }
  0x23   :  { %v93_v42 = vxor.u32 %v161_v40, %v90_v39 }
  0x25   :  { %vm94_vm2 = vcmp.ge.s32.totalorder %v93_v42, 1288490189 }
  0x98   :  { %v66_v43 = vpop.f32.mrf.mxu0 }
  0x99   :  { %v67_v44 = vadd.f32 %v165_v41, %v66_v43 }
  0x9b   :  { %v69_v45 = vmax.f32 %v67_v44, 0.0 }
  0x9d   :  { %v95_v46 = vsel %vm94_vm2, %v69_v45, 0.0 }
  0x9e   :  { %163 = vmatmul.msk.f32.vlgmr.msra.gmra.mxu1 %vm41_vm1, %v95_v46 }
 0x11b   :  { %v136_v48 = vpop.f32.mrf.mxu1 }
 0x11c   :  { %v137_v49 = vadd.f32 %v166_v47, %v136_v48 }
 0x11e   :  { %140 = vst.msk [vmem:[#allocation4] sm:$0xff] %vm139_vm3, %v137_v49 }
 0x11f   :  { %151 = dma.vmem_to_hbm [thread:$0]  %s147_s7, 128, %s149_s10, [#allocation5]  }
 0x120   :  { %191 = dma.done.wait [#allocation5], 128  }
 0x121   :  { %192 = vsyncadd [#allocation5], 4294967168 }
 0x122   :  { %156 = vsyncpa [#allocation5], 1 }

</bundles_post_ra>
